<compile_context>
chip_gen: v7x
topology: tpu7x:2x2x1
jax: 0.10.0
libtpu: 0.0.40
codegen_flags: <defaults>
</compile_context>

<pallas_src>
import numpy as np
import jax
import jax.numpy as jnp
from jax.experimental import pallas as pl
from jax.experimental.pallas import tpu as pltpu


# ---------------------------------------------------------------------------
# numpy helpers (identical semantics to the PyTorch module's helpers)
# ---------------------------------------------------------------------------
def k_adjacency(A, k, with_self=False, self_factor=1):
    I = np.eye(len(A), dtype=A.dtype)
    if k == 0:
        return I
    Ak = (np.minimum(np.linalg.matrix_power(A + I, k), 1)
          - np.minimum(np.linalg.matrix_power(A + I, k - 1), 1))
    if with_self:
        Ak = Ak + self_factor * I
    return Ak


def normalize_adjacency_matrix(A):
    node_degrees = A.sum(-1)
    degs_inv_sqrt = np.power(node_degrees, -0.5)
    norm_degs_matrix = np.eye(len(node_degrees)) * degs_inv_sqrt
    return (norm_degs_matrix @ A @ norm_degs_matrix).astype(np.float32)


def build_A_powers(A_binary, num_scales):
    A_powers = [k_adjacency(A_binary, k, with_self=True) for k in range(num_scales)]
    A_powers = np.concatenate([normalize_adjacency_matrix(g) for g in A_powers])
    return A_powers.astype(np.float32)   # (num_scales*V, V)


# ---------------------------------------------------------------------------
# Pallas kernel: out = relu(x @ M + shift)
# ---------------------------------------------------------------------------
def ms_gcn_kernel(x_ref, m_ref, shift_ref, o_ref):
    # x_ref:     (tm, CV_pad)      row tile of the flattened input   (bf16 or f32)
    # m_ref:     (CV_pad, tn)      column tile of the folded matrix  (bf16 or f32)
    # shift_ref: (1, tn)           folded bias/BN shift               (f32)
    # o_ref:     (tm, tn)          output tile (lane-dense)           (f32)
    acc = jnp.dot(x_ref[...], m_ref[...], preferred_element_type=jnp.float32)
    acc = acc + shift_ref[...]
    o_ref[...] = jnp.maximum(acc, 0.0).astype(o_ref.dtype)


def _round_up(x, m):
    return ((x + m - 1) // m) * m


def _vmem_capacity_bytes():
    """Generation-aware VMEM capacity; falls back to the smallest (v7x, 64 MiB)."""
    try:
        cap = getattr(pltpu.get_tpu_info(), "vmem_capacity_bytes", None)
        if cap:
            return int(cap)
    except Exception:
        pass
    return 64 * 1024 * 1024


def _pick_tiles(NT, CV_pad, OV_pad, in_itemsize, out_itemsize, budget):
    """Choose (tm, tn): large lane-dense tiles that fit a double-buffered VMEM budget."""
    tn = min(OV_pad, 512)                            # multiple of 128 by construction
    rows = _round_up(NT, 8)
    tm = min(1024, rows)
    if rows >= 16:                                   # keep >= 2 row blocks (v7x has 2 TCs)
        tm = min(tm, _round_up((rows + 1) // 2, 8))
    tm = (tm // 256) * 256 if tm >= 256 else _round_up(tm, 8)

    def vmem_use(tm_, tn_):
        return (2 * tm_ * CV_pad * in_itemsize       # x tile  (double-buffered)
                + 2 * CV_pad * tn_ * in_itemsize     # M tile  (double-buffered)
                + 2 * 8 * tn_ * 4                    # shift   (sublane-padded, dbl-buffered)
                + 2 * tm_ * tn_ * out_itemsize)      # out tile (double-buffered)

    while tm > 8 and vmem_use(tm, tn) > budget:      # shrink rows first, keep stores wide
        tm = max(8, _round_up(tm // 2, 8))
    while tn > 128 and vmem_use(tm, tn) > budget:
        tn -= 128
    return tm, tn


def ms_gcn_forward(x, A_full, W, b, bn_gamma, bn_beta, bn_mean, bn_var,
                   num_scales, eps=1e-5, compute_dtype=jnp.bfloat16):
    """x: (N, C, T, V) float32 (PyTorch NCHW convention). Returns (N, O, T, V)."""
    N, C, T, V = x.shape
    S = num_scales
    O = W.shape[0]
    assert A_full.shape[0] == S * V
    CV, OV = C * V, O * V

    # --- fold BN (eval mode) + conv bias + adjacency + 1x1 conv into (M, shift) ---
    bn_scale = bn_gamma / jnp.sqrt(bn_var + eps)                 # (O,)
    bn_shift = bn_beta - bn_mean * bn_scale                      # (O,)
    Wp = (bn_scale[:, None] * W).reshape(O, S, C)                # Wp[o, s, c]
    A3 = A_full.reshape(S, V, V)                                 # A3[s, v, u]
    # M[c*V+u, o*V+v] = sum_s Wp[o,s,c] * A3[s,v,u]
    M = jnp.einsum('osc,svu->cuov', Wp, A3).reshape(CV, OV).astype(jnp.float32)
    shift_full = b * bn_scale + bn_shift                         # (O,)
    shift_ov = jnp.broadcast_to(shift_full[:, None], (O, V)).reshape(1, OV)
    shift_ov = shift_ov.astype(jnp.float32)

    # --- rearrange input to (N*T, C*V): row (n,t), column (c,u) ---
    x_r = jnp.transpose(x, (0, 2, 1, 3)).reshape(N * T, CV)
    NT = N * T

    # --- pad K and output width to full lanes (zero-padding is mathematically free) ---
    CV_pad = _round_up(CV, 128)
    OV_pad = _round_up(OV, 128)

    # --- generation-aware VMEM budget + tile selection (double-buffer aware) ---
    vmem_limit = min(_vmem_capacity_bytes() - 8 * 1024 * 1024, 112 * 1024 * 1024)
    budget = int(vmem_limit * 0.85)
    in_itemsize = jnp.dtype(compute_dtype).itemsize
    out_itemsize = jnp.dtype(x.dtype).itemsize
    tm, tn = _pick_tiles(NT, CV_pad, OV_pad, in_itemsize, out_itemsize, budget)

    # --- pad rows to a multiple of tm, cast the two big operands to compute_dtype ---
    NT_pad = _round_up(NT, tm)
    x_p = jnp.pad(x_r, ((0, NT_pad - NT), (0, CV_pad - CV))).astype(compute_dtype)
    M_p = jnp.pad(M, ((0, CV_pad - CV), (0, OV_pad - OV))).astype(compute_dtype)
    shift_p = jnp.pad(shift_ov, ((0, 0), (0, OV_pad - OV)))

    grid = (NT_pad // tm, OV_pad // tn)

    out_r = pl.pallas_call(
        ms_gcn_kernel,
        out_shape=jax.ShapeDtypeStruct((NT_pad, OV_pad), x.dtype),
        grid=grid,
        in_specs=[
            pl.BlockSpec((tm, CV_pad), lambda i, j: (i, 0)),
            pl.BlockSpec((CV_pad, tn), lambda i, j: (0, j)),
            pl.BlockSpec((1, tn), lambda i, j: (0, j)),
        ],
        out_specs=pl.BlockSpec((tm, tn), lambda i, j: (i, j)),
        compiler_params=pltpu.CompilerParams(
            dimension_semantics=("parallel", "parallel"),
            vmem_limit_bytes=vmem_limit),
    )(x_p, M_p, shift_p)

    # --- back to PyTorch layout (N, O, T, V) ---
    out_r = out_r[:NT, :OV].reshape(N, T, O, V)
    return jnp.transpose(out_r, (0, 2, 1, 3))


# ---------------------------------------------------------------------------
# pure-JAX reference (mirrors the PyTorch forward, eval-mode BN)
# ---------------------------------------------------------------------------
def ms_gcn_reference(x, A_full, W, b, bn_gamma, bn_beta, bn_mean, bn_var,
                     num_scales, eps=1e-5):
    N, C, T, V = x.shape
    support = jnp.einsum('vu,nctu->nctv', A_full, x)          # (N, C, T, S*V)
    support = support.reshape(N, C, T, num_scales, V)
    support = jnp.transpose(support, (0, 3, 1, 2, 4)).reshape(N, num_scales * C, T, V)
    out = jnp.einsum('ok,nktv->notv', W, support) + b[None, :, None, None]
    out = ((out - bn_mean[None, :, None, None])
           / jnp.sqrt(bn_var + eps)[None, :, None, None]
           * bn_gamma[None, :, None, None] + bn_beta[None, :, None, None])
    return jnp.maximum(out, 0.0)


# ---------------------------------------------------------------------------
if __name__ == "__main__":
    # small shapes consistent with MS_GCN: x is (N, C, T, V)
    N, C, T, V = 2, 4, 8, 16
    num_scales = 3
    out_channels = 8

    # deterministic binary adjacency: ring graph over V nodes (symmetric, no self-loops)
    A_binary = np.zeros((V, V), dtype=np.float64)
    for i in range(V):
        A_binary[i, (i + 1) % V] = 1.0
        A_binary[(i + 1) % V, i] = 1.0

    A_powers = jnp.asarray(build_A_powers(A_binary, num_scales))   # (S*V, V)

    key = jax.random.PRNGKey(0)
    k_x, k_res, k_w, k_b = jax.random.split(key, 4)

    x = jax.random.normal(k_x, (N, C, T, V), dtype=jnp.float32)

    # A_res ~ uniform(-1e-6, 1e-6), same shape as A_powers (use_mask=True)
    A_res = jax.random.uniform(k_res, A_powers.shape, dtype=jnp.float32,
                               minval=-1e-6, maxval=1e-6)
    A_full = A_powers + A_res

    # Conv2d(in=C*num_scales, out=out_channels, kernel_size=1) params
    fan_in = C * num_scales
    bound = 1.0 / np.sqrt(fan_in)
    W = jax.random.uniform(k_w, (out_channels, num_scales * C), dtype=jnp.float32,
                           minval=-bound, maxval=bound)
    b = jax.random.uniform(k_b, (out_channels,), dtype=jnp.float32,
                           minval=-bound, maxval=bound)

    # BatchNorm2d(out_channels) at PyTorch init, inference mode
    bn_gamma = jnp.ones((out_channels,), dtype=jnp.float32)
    bn_beta = jnp.zeros((out_channels,), dtype=jnp.float32)
    bn_mean = jnp.zeros((out_channels,), dtype=jnp.float32)
    bn_var = jnp.ones((out_channels,), dtype=jnp.float32)

    args = (x, A_full, W, b, bn_gamma, bn_beta, bn_mean, bn_var, num_scales)

    # perf path: bf16 operands, f32 accumulation
    out_bf16 = jax.block_until_ready(ms_gcn_forward(*args, compute_dtype=jnp.bfloat16))
    # structural check path: full f32
    out_f32 = jax.block_until_ready(ms_gcn_forward(*args, compute_dtype=jnp.float32))

    ref = jax.block_until_ready(ms_gcn_reference(*args))

    assert out_bf16.shape == (N, out_channels, T, V), out_bf16.shape
    assert out_f32.shape == (N, out_channels, T, V), out_f32.shape

    # f32 path validates the fold / padding / tiling exactly
    np.testing.assert_allclose(np.asarray(out_f32), np.asarray(ref),
                               rtol=1e-4, atol=1e-4)
    # bf16 path: operand rounding (~2^-9 relative) -> looser tolerance; accumulation is f32
    np.testing.assert_allclose(np.asarray(out_bf16), np.asarray(ref),
                               rtol=2e-2, atol=2e-2)

    print("KERNEL_OK")
</pallas_src>

<mosaic_0001>
module attributes {stable_mosaic.version = 11 : i64} {
  func.func @ms_gcn_kernel(%arg0: i32, %arg1: i32, %arg2: memref<8x128xbf16, #tpu.memory_space<vmem>>, %arg3: memref<128x128xbf16, #tpu.memory_space<vmem>>, %arg4: memref<1x128xf32, #tpu.memory_space<vmem>>, %arg5: memref<8x128xf32, #tpu.memory_space<vmem>>) attributes {dimension_semantics = [#tpu.dimension_semantics<parallel>, #tpu.dimension_semantics<parallel>], iteration_bounds = array<i64: 2, 1>, scalar_prefetch = 0 : i64, scratch_operands = 0 : i64, tpu.core_type = #tpu.core_type<tc>, window_params = [{transform_indices = @transform_0, window_bounds = array<i64: 8, 128>}, {transform_indices = @transform_1, window_bounds = array<i64: 128, 128>}, {transform_indices = @transform_2, window_bounds = array<i64: 1, 128>}, {transform_indices = @transform_3, window_bounds = array<i64: 8, 128>}]} {
    %c0 = arith.constant 0 : index
    %c0_0 = arith.constant 0 : index
    %0 = vector.load %arg2[%c0, %c0_0] : memref<8x128xbf16, #tpu.memory_space<vmem>>, vector<8x128xbf16>
    %c0_1 = arith.constant 0 : index
    %c0_2 = arith.constant 0 : index
    %1 = vector.load %arg3[%c0_1, %c0_2] : memref<128x128xbf16, #tpu.memory_space<vmem>>, vector<128x128xbf16>
    %cst = arith.constant dense<0.000000e+00> : vector<8x128xf32>
    %2 = tpu.matmul %0, %1, %cst {dimension_numbers = #tpu.dot_dimension_numbers<[1], [0], [0], [1], [0, 0, 1, 1], [], []>} : vector<8x128xbf16>, vector<128x128xbf16>, vector<8x128xf32> -> vector<8x128xf32>
    %c0_3 = arith.constant 0 : index
    %c0_4 = arith.constant 0 : index
    %3 = vector.load %arg4[%c0_3, %c0_4] : memref<1x128xf32, #tpu.memory_space<vmem>>, vector<1x128xf32>
    %4 = vector.broadcast %3 : vector<1x128xf32> to vector<8x128xf32>
    %5 = arith.addf %2, %4 : vector<8x128xf32>
    %cst_5 = arith.constant 0.000000e+00 : f32
    %6 = vector.broadcast %cst_5 : f32 to vector<8x128xf32>
    %7 = arith.maximumf %5, %6 : vector<8x128xf32>
    %c0_6 = arith.constant 0 : index
    %c0_7 = arith.constant 0 : index
    %8 = vector.load %arg5[%c0_6, %c0_7] : memref<8x128xf32, #tpu.memory_space<vmem>>, vector<8x128xf32>
    tpu.vector_store %arg5[%c0_6, %c0_7], %7 {strides = array<i32>} : memref<8x128xf32, #tpu.memory_space<vmem>>, vector<8x128xf32>,
    return
  }
  func.func @transform_0(%arg0: i32, %arg1: i32) -> (i32, i32) {
    %c0_i32 = arith.constant 0 : i32
    %c0_i32_0 = arith.constant 0 : i32
    return %arg0, %c0_i32 : i32, i32
  }
  func.func @transform_1(%arg0: i32, %arg1: i32) -> (i32, i32) {
    %c0_i32 = arith.constant 0 : i32
    %c0_i32_0 = arith.constant 0 : i32
    return %c0_i32, %arg1 : i32, i32
  }
  func.func @transform_2(%arg0: i32, %arg1: i32) -> (i32, i32) {
    %c0_i32 = arith.constant 0 : i32
    %c0_i32_0 = arith.constant 0 : i32
    return %c0_i32, %arg1 : i32, i32
  }
  func.func @transform_3(%arg0: i32, %arg1: i32) -> (i32, i32) {
    %c0_i32 = arith.constant 0 : i32
    return %arg0, %arg1 : i32, i32
  }
}

</mosaic_0001>

<bundles_post_ra>
// kernel: tpu_custom_call.1
= control target key start
LH: loop header
LB: loop body
LE: loop exit
PB: predicated region body
PF: predicated region fallthrough
CT: control target
= control target key end

     0   :  { %8 = vsyncpa [#allocation3], 0  ;;  %s1002_s0 = inlined_call_operand.hbm [shape: bf16[16,128], index: 0, kind: input, shape index: {}]   ;;  %s1003_s1 = inlined_call_operand.hbm [shape: bf16[128,128], index: 1, kind: input, shape index: {}]   ;;  %s1004_s2 = inlined_call_operand.vmem [shape: f32[1,128], index: 2, kind: input, shape index: {}]   ;;  %s1005_s3 = inlined_call_operand.hbm [shape: f32[16,128], index: 3, kind: output, shape index: {}]  }
   0x1   :  { %10 = vsyncpa [#allocation3 + $0x1], 0 }
   0x2   :  { %11 = vsyncpa [#allocation6], 0 }
   0x3   :  { %12 = vsyncpa [#allocation4], 0 }
   0x4   :  { %14 = vsyncpa [#allocation4 + $0x1], 0  ;;  %s781_s12 = smov 0   ;;  %s783_s13 = smov 0  }
   0x5   :  { %s785_s14 = smov 0   ;;  %s787_s15 = smov 0  }
   0x6   :  { %s789_s16 = smov 0   ;;  %s791_s17 = smov 0  }
   0x7 LB: > { %s469_s18 = sadd.s32 4294967295, %s752_s17   ;;  %s470_s19 = sadd.s32 4294967294, %s752_s17   ;;  %s752_s17 = sphi %s791_s17, %s20_s17   ;;  %s748_s16 = sphi %s789_s16, %s1029_s16   ;;  %s744_s15 = sphi %s787_s15, %s1028_s15   ;;  %s740_s14 = sphi %s785_s14, %s1027_s14   ;;  %s736_s13 = sphi %s783_s13, %s1026_s13   ;;  %s732_s12 = sphi %s781_s12, %s1025_s12  }
   0x8   : > { %p52_p0 = scmp.ne.s32.totalorder %s736_s13, %s732_s12  ;;  %p815_p1 = scmp.eq.s32.totalorder %s469_s18, 0 }
   0x9   : > { %p819_p2 = scmp.eq.s32.totalorder %s469_s18, 1  ;;  %p136_p3 = scmp.eq.s32.totalorder %s470_s19, 1 }
   0xa   : > { %s1010_s20 = scalar_select %p815_p1, 1, 0 }
   0xb   : > { %s1011_s21 = scalar_select %p819_p2, 1, 0 }
   0xc   : > { %p825_p4 = por %p815_p1, %p52_p0  ;;  %p471_p5 = scmp.ge.s32.totalorder %s752_s17, 1 }
   0xd   : > { %p830_p6 = por %p136_p3, %p52_p0  ;;  %p143_p7 = scmp.lt.s32.totalorder %s752_s17, 3 }
   0xe   : > { %s1012_s22 = scalar_select %p825_p4, 1, 0 }
   0xf   : > { %s1013_s23 = scalar_select %p830_p6, 1, 0 }
  0x10   : > { %p835_p8 = pnand %p471_p5, %p143_p7  ;;  %s754_s25 = smov [#allocation5]  }
  0x11   : > { %s157_s26 = sshll.u32 %s754_s25, 4  ;;  %s32_s28 = sadd.s32 1, %s748_s16  ;;  %s158_s26 = int_to_ptr.vmem [resolvable:$true] %s157_s26 }
  0x12   : > { %s1014_s24 = scalar_select %p835_p8, 1, 0 }
  0x13   : > { %p531_p9 = pneg %p835_p8  ;;  %s608_s4 = scalar_lea.hbm %s1003_s1, 1024 }
  0x14   : > { %p609_p12 = scmp.ne.s32.totalorder %s1003_s1, %s608_s4  ;;  %p615_p5 = scmp.lt.u32.totalorder %s608_s4, %s1003_s1 }
  0x15   : > { %p844_p11 = pnand %p531_p9, %p815_p1 }
  0x17   : > { %p610_p13 = pneg %p844_p11 }
  0x19   : > { %p611_p0 = pnand %p610_p13, %p609_p12 }
  0x1b   : > { %p612_p3 = pneg %p611_p0 }
  0x1d   : > { %p617_p7 = pnand %p615_p5, %p612_p3 }
  0x1f   : > { %620 = shalt.err (!%p617_p7)
}
  0x20   : > { %s621_s9 = scalar_lea.vmem %s158_s26, 1024  ;;  %p629_p1 = scmp.lt.s32.totalorder %s158_s26, %s158_s26 }
  0x21   : > { %p622_p9 = scmp.ne.s32.totalorder %s158_s26, %s621_s9  ;;  %p630_p4 = scmp.lt.s32.totalorder %s621_s9, %s621_s9 }
  0x23   : > { %p624_p10 = pnand %p622_p9, %p610_p13  ;;  %p631_p8 = por %p630_p4, %p629_p1 }
  0x25   : > { %p625_p6 = pneg %p624_p10 }
  0x27   : > { %p632_p2 = pnand %p631_p8, %p625_p6 }
  0x29   : > { %635 = shalt.err (!%p632_p2)
}
  0x2a   : > { %s755_s10 = smov 64   ;;  %s756_s11 = smov 4  }
  0x2b   : > { %534 = dma.hbm_to_vmem [thread:$0]  (!%p844_p11), %s1003_s1, 1024, %s158_s26, [#allocation6], %s755_s10, %s755_s10, %s756_s11  }
  0x2c   : > { %p34_p1 = scmp.ge.s32.totalorder %s32_s28, 2  ;;  %s39_s25 = sadd.s32 1, %s740_s14 }
  0x2d   : > { %p46_p2 = scmp.ne.s32.totalorder %s740_s14, %s736_s13  ;;  %p47_p4 = scmp.eq.s32.totalorder %s752_s17, 0 }
  0x2e   : > { %s1031_s28 = smov (%p34_p1, %s32_s28), 0  ;;  %p1017_p8 = scmp.ne.s32.totalorder %s1011_s21, 0 }
  0x2f   : > { %p871_p6 = por %p47_p4, %p46_p2  ;;  %s36_s27 = ssub.s32 %s748_s16, %s1031_s28 }
  0x30   : > { %p877_p10 = por %p1017_p8, %p46_p2  ;;  %p544_p12 = scmp.lt.s32.totalorder %s752_s17, 2 }
  0x31   : > { %p37_p11 = scmp.eq.s32.totalorder %s36_s27, 0  ;;  %s177_s26 = sand.u32 1, %s740_s14  }
  0x32   : > { %s475_s4 = sshll.u32 %s177_s26, 2  ;;  %s476_s6 = sshll.u32 %s748_s16, 6 }
  0x33   : > { %s886_s5 = scalar_select %p37_p11, %s740_s14, %s39_s25  }
  0x34   : > { %s892_s9 = scalar_lea.hbm %s1002_s0, %s476_s6  ;;  %s181_s21 = scalar_lea.vmem [#allocation2], %s475_s4 }
  0x35   : > { %s188_s10 = sshll.u32 %s181_s21, 4  ;;  %p898_p13 = pnand %p544_p12, %p871_p6  ;;  %s894_s10 = int_to_ptr.vmem [resolvable:$true] %s188_s10 }
  0x36   : > { %s178_s18 = scalar_lea.sflag [#allocation3], %s177_s26  ;;  %s636_s19 = scalar_lea.hbm %s892_s9, 64 }
  0x37   : > { %p637_p0 = scmp.ne.s32.totalorder %s892_s9, %s636_s19  ;;  %p638_p3 = pneg %p898_p13 }
  0x38   : > { %s641_s4 = scalar_lea.hbm %s1002_s0, 128  ;;  %p642_p9 = scmp.lt.u32.totalorder %s892_s9, %s1002_s0 }
  0x39   : > { %p639_p5 = pnand %p638_p3, %p637_p0  ;;  %p643_p1 = scmp.lt.u32.totalorder %s641_s4, %s636_s19 }
  0x3a   : > { %p645_p4 = scmp.lt.u32.totalorder %s636_s19, %s892_s9 }
  0x3b   : > { %p640_p7 = pneg %p639_p5  ;;  %p644_p2 = por %p643_p1, %p642_p9 }
  0x3d   : > { %p646_p6 = por %p645_p4, %p644_p2 }
  0x3f   : > { %p647_p8 = pnand %p646_p6, %p640_p7 }
  0x41   : > { %650 = shalt.err (!%p647_p8)
}
  0x42   : > { %s651_s26 = scalar_lea.vmem %s894_s10, 64  ;;  %s757_s7 = smov [#allocation2]  }
  0x43   : > { %p652_p12 = scmp.ne.s32.totalorder %s894_s10, %s651_s26  ;;  %s656_s8 = sshll.u32 %s757_s7, 4  ;;  %s657_s8 = int_to_ptr.vmem [resolvable:$false] %s656_s8 }
  0x44   : > { %s658_s21 = scalar_lea.vmem %s657_s8, 128  ;;  %p659_p5 = scmp.lt.s32.totalorder %s894_s10, %s657_s8 }
  0x45   : > { %p654_p11 = pnand %p652_p12, %p638_p3  ;;  %p660_p9 = scmp.lt.s32.totalorder %s658_s21, %s651_s26 }
  0x47   : > { %p655_p0 = pneg %p654_p11  ;;  %p661_p1 = por %p660_p9, %p659_p5 }
  0x49   : > { %p662_p2 = pnand %p661_p1, %p655_p0 }
  0x4b   : > { %665 = shalt.err (!%p662_p2)
}
  0x4c   : > { %538 = dma.hbm_to_vmem [thread:$0]  (!%p898_p13), %s892_s9, 64, %s894_s10, %s178_s18  }
  0x4d   : > { %p1020_p7 = scmp.ne.s32.totalorder %s1014_s24, 0 }
  0x4e   : > { %s930_s19 = sand.u32 (!%p1020_p7), 1, %s736_s13   ;;  %p1021_p3 = scmp.ne.s32.totalorder (!%p1020_p7), %s1012_s22, 0 }
  0x4f   : > { %197 = sbr.rel (%p1020_p7) target bundleno = 353 (0x161), region = 32  ;;  %s478_s25 = sshll.u32 (!%p1020_p7), %s930_s19, 2 }
  0x50   : > { %s200_s27 = scalar_lea.sflag (!%p1020_p7), [#allocation3], %s930_s19  ;;  %s934_s4 = scalar_lea.vmem (!%p1020_p7), [#allocation2], %s478_s25 }
  0x56   : > { %719 = dma.done.wait (%p1021_p3), %s200_s27, 64  }
  0x57   : > { %721 = vsyncadd (%p1021_p3), %s200_s27, 4294967232  ;;  %p1022_p13 = scmp.ne.s32.totalorder %s1010_s20, 0 }
  0x59   : > { %723 = dma.done.wait (%p1022_p13), [#allocation6], 1024  }
  0x5a   : > { %725 = vsyncadd (%p1022_p13), [#allocation6], 4294966272  ;;  %v758_v0 = vmov 0.0   ;;  %vm759_vm0 = vmmov 0   ;;  %v600_v1 = vld [vmem:[#allocation5] sm:$0xff]   ;;  %v601_v2 = vld [vmem:[#allocation5 + $0x8] sm:$0xff]  }
  0x5b   : > { %503 = vmatprep.subr.bf16.mxu0 %v758_v0  ;;  %519 = vmatprep.mubr.msk.bf16.mxu0 %vm759_vm0, %v758_v0  ;;  %v602_v3 = vld [vmem:[#allocation5 + $0x10] sm:$0xff]   ;;  %v603_v4 = vld [vmem:[#allocation5 + $0x18] sm:$0xff]   ;;  %v604_v5 = vld [vmem:[#allocation5 + $0x20] sm:$0xff]   ;;  %s480_s20 = sshll.u32 %s930_s19, 3  ;;  %s491_s9 = sshll.u32 %s744_s15, 7 }
  0x5c   : > { %504 = vmatpush3.bf16.msra.mxu0 %v600_v1  ;;  %v605_v6 = vld [vmem:[#allocation5 + $0x28] sm:$0xff]   ;;  %v606_v7 = vld [vmem:[#allocation5 + $0x30] sm:$0xff]   ;;  %v607_v8 = vld [vmem:[#allocation5 + $0x38] sm:$0xff]   ;;  %s232_s10 = scalar_lea.vmem [#allocation7], %s480_s20  ;;  %s953_s6 = scalar_lea.hbm %s1005_s3, %s491_s9 }
  0x5d   : > { %505 = vmatprep.subr.bf16.mxu0 %v758_v0  ;;  %v237_v9 = vld [vmem:[%s934_s4] sm:$0xf]  ;;  %s366_s11 = sshll.u32 %s232_s10, 4  ;;  %s352_s26 = scalar_lea.sflag [#allocation4], %s930_s19  ;;  %s955_s11 = int_to_ptr.vmem [resolvable:$true] %s366_s11 }
  0x5e   : > { %v481_v10 = vld [vmem:[%s1004_s2] ss:$0 sm:$0xff]  ;;  %s666_s15 = scalar_lea.vmem %s955_s11, 128  ;;  %s760_s7 = smov [#allocation7]  }
  0x5f   : > { %p667_p4 = scmp.ne.s32.totalorder %s955_s11, %s666_s15  ;;  %s670_s8 = sshll.u32 %s760_s7, 4  ;;  %s671_s8 = int_to_ptr.vmem [resolvable:$false] %s670_s8 }
  0x60   : > { %506 = vmatpush3.bf16.msra.mxu0 %v601_v2  ;;  %s672_s21 = scalar_lea.vmem %s671_s8, 256  ;;  %p673_p12 = scmp.lt.s32.totalorder %s955_s11, %s671_s8 }
  0x61   : > { %507 = vmatprep.subr.bf16.mxu0 %v758_v0  ;;  %p668_p6 = pnand %p667_p4, %p877_p10  ;;  %p674_p11 = scmp.lt.s32.totalorder %s672_s21, %s666_s15 }
  0x63   : > { %p669_p8 = pneg %p668_p6  ;;  %p675_p0 = por %p674_p11, %p673_p12 }
  0x64   : > { %508 = vmatpush3.bf16.msra.mxu0 %v602_v3 }
  0x65   : > { %509 = vmatprep.subr.bf16.mxu0 %v758_v0  ;;  %p676_p5 = pnand %p675_p0, %p669_p8 }
  0x68   : > { %510 = vmatpush3.bf16.msra.mxu0 %v603_v4 }
  0x69   : > { %511 = vmatprep.subr.bf16.mxu0 %v758_v0 }
  0x6c   : > { %512 = vmatpush3.bf16.msra.mxu0 %v604_v5 }
  0x6d   : > { %513 = vmatprep.subr.bf16.mxu0 %v758_v0 }
  0x70   : > { %514 = vmatpush3.bf16.msra.mxu0 %v605_v6 }
  0x71   : > { %515 = vmatprep.subr.bf16.mxu0 %v758_v0 }
  0x74   : > { %516 = vmatpush3.bf16.msra.mxu0 %v606_v7 }
  0x75   : > { %517 = vmatprep.subr.bf16.mxu0 %v758_v0 }
  0x78   : > { %518 = vmatpush3.bf16.msra.mxu0 %v607_v8 }
  0x7b   : > { %520 = vmatmul.mubr.bf16.vlgmr.msra.gmra.mrb[0].mxu0 %v237_v9 }
 0x14e   : > { %v343_v11 = vpop.f32.mrb[0].mxu0 }
 0x14f   : > { %v344_v12 = vadd.f32 %v481_v10, %v343_v11  ;;  %v521_v13 = vpop.f32.mrb[1].mxu0 }
 0x150   : > { %v346_v14 = vpop.f32.mrb[2].mxu0 }
 0x151   : > { %v349_v15 = vmax.f32 %v344_v12, 0.0  ;;  %v522_v16 = vpop.f32.mrb[3].mxu0 }
 0x153   : > { %350 = vst [vmem:[%s232_s10] sm:$0xff] %v349_v15 }
 0x154   : > { %679 = shalt.err (!%p676_p5)
}
 0x155   : > { %s680_s19 = scalar_lea.hbm %s953_s6, 128  ;;  %s684_s4 = scalar_lea.hbm %s1005_s3, 256 }
 0x156   : > { %p681_p9 = scmp.ne.s32.totalorder %s953_s6, %s680_s19  ;;  %p685_p7 = scmp.lt.u32.totalorder %s953_s6, %s1005_s3 }
 0x157   : > { %p686_p3 = scmp.lt.u32.totalorder %s684_s4, %s680_s19  ;;  %p688_p4 = scmp.lt.u32.totalorder %s680_s19, %s953_s6 }
 0x158   : > { %p682_p1 = pnand %p681_p9, %p877_p10 }
 0x159   : > { %p687_p13 = por %p686_p3, %p685_p7 }
 0x15a   : > { %p683_p2 = pneg %p682_p1 }
 0x15b   : > { %p689_p6 = por %p688_p4, %p687_p13 }
 0x15d   : > { %p690_p8 = pnand %p689_p6, %p683_p2 }
 0x15f   : > { %693 = shalt.err (!%p690_p8)
}
 0x160   : > { %529 = dma.vmem_to_hbm [thread:$0]  (%p877_p10), %s955_s11, 128, %s953_s6, %s352_s26  }
 0x161 PF: > { %s378_s24 = sand.u32 1, %s732_s12   ;;  %p1023_p12 = scmp.ne.s32.totalorder %s1013_s23, 0 }
 0x162   : > { %p1024_p11 = scmp.ge.s32.totalorder %s752_s17, 2  ;;  %s379_s9 = scalar_lea.sflag [#allocation4], %s378_s24 }
 0x164   : > { %p540_p0 = pnand %p1024_p11, %p1023_p12 }
 0x166   : > { %727 = dma.done.wait (!%p540_p0), %s379_s9, 128  }
 0x167   : > { %729 = vsyncadd (!%p540_p0), %s379_s9, 4294967168  ;;  %s20_s17 = sadd.s32 1, %s752_s17   ;;  %s1025_s12 = smov %s736_s13 }
 0x168   : > { %p17_p5 = scmp.ge.s32.totalorder %s20_s17, 4   ;;  %s1026_s13 = smov %s740_s14 }
 0x169   : > { %s1027_s14 = smov %s886_s5  ;;  %s1028_s15 = smov %s748_s16 }
 0x16a   : > { %s1029_s16 = smov %s1031_s28  ;;  %19 = sbr.rel (!%p17_p5) target bundleno = 7 (0x7), region = 85 }
 0x171   :  { %384 = vsyncpa [#allocation3], 1 }
 0x172   :  { %386 = vsyncpa [#allocation3 + $0x1], 1 }
 0x173   :  { %387 = vsyncpa [#allocation6], 1 }
 0x174   :  { %388 = vsyncpa [#allocation4], 1 }
 0x175   :  { %390 = vsyncpa [#allocation4 + $0x1], 1 }

</bundles_post_ra>
